<compile_context>
chip_gen: v7x
topology: tpu7x:2x2x1
jax: 0.10.0
libtpu: 0.0.40
codegen_flags: <defaults>
</compile_context>

<pallas_src>
import functools

import jax
import jax.numpy as jnp
import numpy as np
from jax.experimental import pallas as pl
from jax.experimental.pallas import tpu as pltpu


def _round_up(x, m):
    return ((x + m - 1) // m) * m


def _vmem_capacity_bytes():
    """Physical VMEM capacity (128 MiB on v5e/v6e, 64 MiB per core on v7x)."""
    try:
        return int(pltpu.get_tpu_info().vmem_capacity_bytes)
    except Exception:
        # Conservative fallback (assume the smaller v7x VMEM).
        return 64 * 1024 * 1024


# --------------------------------------------------------------------------
# Kernel bodies (C is a small static channel count; the add chain is unrolled
# on the VPU — no cross-lane XLU reductions anywhere).
# --------------------------------------------------------------------------

def _make_kernel_global(C):
    def kernel(*refs):
        # refs: x_0..x_{C-1} (TB, Ts), w (TB, C), out (TB, Ts)
        x_refs = refs[:C]
        w_ref = refs[C]
        out_ref = refs[C + 1]
        w = w_ref[...].astype(jnp.float32)                    # (TB, C)
        acc = x_refs[0][...].astype(jnp.float32) * w[:, 0:1]  # lane-broadcast
        for c in range(1, C):
            acc = acc + x_refs[c][...].astype(jnp.float32) * w[:, c:c + 1]
        out_ref[...] = acc.astype(out_ref.dtype)
    return kernel


def _make_kernel_ts_channel_major(C):
    def kernel(*refs):
        # refs: x_0..x_{C-1} (TB, Ts), m (C, TB, Ts), out (TB, Ts)
        x_refs = refs[:C]
        m_ref = refs[C]
        out_ref = refs[C + 1]
        acc = x_refs[0][...].astype(jnp.float32) * m_ref[0].astype(jnp.float32)
        for c in range(1, C):
            acc = acc + (x_refs[c][...].astype(jnp.float32)
                         * m_ref[c].astype(jnp.float32))
        out_ref[...] = acc.astype(out_ref.dtype)
    return kernel


def _make_kernel_ts_interleaved(C, tile_s):
    def kernel(*refs):
        # refs: x_0..x_{C-1} (TB, Ts), m (TB, Ts*C) channel-interleaved, out (TB, Ts)
        x_refs = refs[:C]
        m_ref = refs[C]
        out_ref = refs[C + 1]
        acc = None
        for c in range(C):
            # Stride-C lane slice extracts channel c from the native
            # interleaved mix block (no out-of-kernel relayout needed).
            mc = m_ref[:, pl.ds(c, tile_s, stride=C)].astype(jnp.float32)
            term = x_refs[c][...].astype(jnp.float32) * mc
            acc = term if acc is None else acc + term
        out_ref[...] = acc.astype(out_ref.dtype)
    return kernel


# --------------------------------------------------------------------------
# One-time verification that stride-C lane slices lower (and compute
# correctly) on this Mosaic build.  Cached per (C, dtype).
# --------------------------------------------------------------------------

@functools.lru_cache(maxsize=None)
def _strided_lane_slice_supported(C, mix_dtype_name):
    if C == 1:
        return True
    try:
        dt = jnp.dtype(mix_dtype_name)
        TB, TS = 8, 128

        def probe_kernel(m_ref, o_ref):
            acc = m_ref[:, pl.ds(0, TS, stride=C)].astype(jnp.float32)
            for c in range(1, C):
                acc = acc + m_ref[:, pl.ds(c, TS, stride=C)].astype(jnp.float32)
            o_ref[...] = acc

        m = (jnp.arange(TB * TS * C, dtype=jnp.float32) % 37.0).astype(dt)
        m = m.reshape(TB, TS * C)
        out = pl.pallas_call(
            probe_kernel,
            out_shape=jax.ShapeDtypeStruct((TB, TS), jnp.float32),
        )(m)
        out = jax.block_until_ready(out)
        ref = m.astype(jnp.float32).reshape(TB, TS, C).sum(axis=-1)
        return bool(jnp.allclose(out, ref, rtol=1e-3, atol=1e-3))
    except Exception:
        return False


# --------------------------------------------------------------------------
# Wrapper
# --------------------------------------------------------------------------

def mixer(signals, mix):
    """Pallas implementation of Mixer.forward.

    signals: list of arrays, each (B, E, S)
    mix:     (B, E, S, C) or (B, E, 1, C)
    returns: (B, E, S)
    """
    C = len(signals)
    B, E, S = signals[0].shape
    for s in signals:
        assert s.shape == (B, E, S)
    is_time_series = mix.shape == (B, E, S, C)
    is_global = mix.shape == (B, E, 1, C)
    assert is_time_series or is_global

    BE = B * E
    out_dtype = jnp.result_type(*([s.dtype for s in signals] + [mix.dtype]))

    # Signals: free, contiguous reshape only (no transpose, no stacking).
    xs = [s.reshape(BE, S) for s in signals]

    use_interleaved = (is_time_series and
                       _strided_lane_slice_supported(
                           C, jnp.dtype(mix.dtype).name))

    sig_item = [jnp.dtype(s.dtype).itemsize for s in signals]
    mix_item = jnp.dtype(mix.dtype).itemsize
    out_item = jnp.dtype(out_dtype).itemsize

    def per_step_bytes(tb, ts):
        b = sum(tb * ts * it for it in sig_item)       # C signal blocks
        b += tb * ts * out_item                        # output block
        if is_time_series:
            b += tb * ts * C * mix_item                # mix block (either layout)
        else:
            b += tb * 128 * mix_item                   # (TB, C) table, lane-padded
        return b

    # --- Tile sizing -------------------------------------------------------
    capacity = _vmem_capacity_bytes()
    # ~48 MiB on 128-MiB parts (v5e/v6e), half of capacity (32 MiB) on v7x.
    budget = min(48 * 1024 * 1024, capacity // 2)

    TARGET_BLOCK_ELEMS = 512 * 1024   # ~2 MiB per f32 operand block
    TB = min(256, _round_up(BE, 8))
    # Couple tile_s to TB so the block area hits the target even for small BE.
    tile_s = min(min(8192, _round_up(S, 128)),
                 max(128, _round_up(TARGET_BLOCK_ELEMS // TB, 128)))

    # Shrink until the double-buffered per-step working set (+20% slack) fits.
    while 2 * per_step_bytes(TB, tile_s) * 1.2 > budget:
        if tile_s > 128:
            tile_s = max(128, _round_up(tile_s // 2, 128))
        elif TB > 8:
            TB = max(8, _round_up(TB // 2, 8))
        else:
            break

    gr = pl.cdiv(BE, TB)
    gs = pl.cdiv(S, tile_s)
    # v7x has 2 TensorCores: guarantee >=2 grid steps when the shape allows,
    # preferring to split rows (keeps output tiles lane-dense and sequential).
    if gr * gs < 2:
        if BE > 8:
            TB = _round_up(-(-BE // 2), 8)
            gr = pl.cdiv(BE, TB)
        elif S > 128:
            tile_s = _round_up(-(-S // 2), 128)
            gs = pl.cdiv(S, tile_s)
    grid = (gr, gs)

    # Explicit VMEM limit: double-buffered working set + 20% slack.
    vmem_limit = int(2 * per_step_bytes(TB, tile_s) * 1.2) + (1 << 20)
    vmem_limit = max(vmem_limit, 16 * 1024 * 1024)
    vmem_limit = min(vmem_limit, capacity)

    x_specs = [pl.BlockSpec((TB, tile_s), lambda i, j: (i, j))
               for _ in range(C)]
    out_spec = pl.BlockSpec((TB, tile_s), lambda i, j: (i, j))

    if is_time_series:
        if use_interleaved:
            # Native channel-interleaved layout; reshape is free (contiguous).
            m = mix.reshape(BE, S * C)
            m_spec = pl.BlockSpec((TB, tile_s * C), lambda i, j: (i, j))
            kernel = _make_kernel_ts_interleaved(C, tile_s)
        else:
            # Fallback: one whole-tensor relayout to channel-major (C, BE, S).
            # TODO(synk): drop once stride-C lane slices lower everywhere (or
            # the producer emits channel-major mix upstream).
            m = jnp.moveaxis(mix, 3, 0).reshape(C, BE, S)
            m_spec = pl.BlockSpec((C, TB, tile_s), lambda i, j: (0, i, j))
            kernel = _make_kernel_ts_channel_major(C)
    else:
        # Global mix: C scalars per (b, e) row -> tiny (BE, C) table.  The
        # sample axis j is innermost in the grid, so this block's index (i, 0)
        # is constant across consecutive steps and Pallas skips re-fetching.
        m = mix.reshape(BE, C)
        m_spec = pl.BlockSpec((TB, C), lambda i, j: (i, 0))
        kernel = _make_kernel_global(C)

    # NOTE: ragged last tiles (BE % TB != 0 or S % tile_s != 0) read padded /
    # undefined data which is multiplied and never written back.  Keep this
    # kernel free of ops that could trap on that garbage (no log/div/sqrt).
    out = pl.pallas_call(
        kernel,
        out_shape=jax.ShapeDtypeStruct((BE, S), out_dtype),
        grid_spec=pltpu.PrefetchScalarGridSpec(
            num_scalar_prefetch=0,
            grid=grid,
            in_specs=x_specs + [m_spec],
            out_specs=out_spec,
        ),
        compiler_params=pltpu.CompilerParams(
            dimension_semantics=("parallel", "parallel"),
            vmem_limit_bytes=vmem_limit,
        ),
    )(*xs, m)

    return out.reshape(B, E, S)


def mixer_ref(signals, mix):
    stacked = jnp.stack(signals, axis=-1)
    return jnp.sum(stacked * mix, axis=-1)


if __name__ == "__main__":
    # Small deterministic example consistent with the module's forward.
    B, E, S, C = 2, 4, 256, 4
    key = jax.random.PRNGKey(0)
    keys = jax.random.split(key, C + 2)

    signals = [jax.random.normal(keys[i], (B, E, S), dtype=jnp.float32)
               for i in range(C)]
    mix_ts = jax.random.normal(keys[C], (B, E, S, C), dtype=jnp.float32)
    mix_global = jax.random.normal(keys[C + 1], (B, E, 1, C), dtype=jnp.float32)

    # Time-series mix path.
    out_ts = jax.block_until_ready(mixer(signals, mix_ts))
    ref_ts = mixer_ref(signals, mix_ts)
    np.testing.assert_allclose(np.asarray(out_ts), np.asarray(ref_ts),
                               rtol=1e-5, atol=1e-5)
    assert out_ts.shape == (B, E, S)

    # Global mix path (per-row weights, broadcast over samples in-kernel).
    out_g = jax.block_until_ready(mixer(signals, mix_global))
    ref_g = mixer_ref(signals, mix_global)
    np.testing.assert_allclose(np.asarray(out_g), np.asarray(ref_g),
                               rtol=1e-5, atol=1e-5)
    assert out_g.shape == (B, E, S)

    # Ragged sample count (S not a multiple of 128): exercises cdiv grid +
    # masked last tile.
    Sr = 200
    sig_r = [jax.random.normal(keys[i], (B, E, Sr), dtype=jnp.float32)
             for i in range(C)]
    mix_r = jax.random.normal(keys[C], (B, E, Sr, C), dtype=jnp.float32)
    out_r = jax.block_until_ready(mixer(sig_r, mix_r))
    ref_r = mixer_ref(sig_r, mix_r)
    np.testing.assert_allclose(np.asarray(out_r), np.asarray(ref_r),
                               rtol=1e-5, atol=1e-5)

    # Mixed dtypes: bf16 signals with f32 mix -> f32 output (promotion),
    # f32 accumulation in-kernel.
    sig_bf = [s.astype(jnp.bfloat16) for s in signals]
    out_bf = jax.block_until_ready(mixer(sig_bf, mix_global))
    ref_bf = mixer_ref(sig_bf, mix_global)
    assert out_bf.dtype == jnp.float32
    np.testing.assert_allclose(np.asarray(out_bf), np.asarray(ref_bf),
                               rtol=1e-4, atol=1e-4)

    print("KERNEL_OK")
</pallas_src>

<mosaic_0001>
module attributes {stable_mosaic.version = 11 : i64} {
  func.func @probe_kernel(%arg0: memref<8x512xf32, #tpu.memory_space<vmem>>, %arg1: memref<8x128xf32, #tpu.memory_space<vmem>>) attributes {dimension_semantics = [], scalar_prefetch = 0 : i64, scratch_operands = 0 : i64, tpu.core_type = #tpu.core_type<tc>} {
    %c0 = arith.constant 0 : index
    %c0_0 = arith.constant 0 : index
    %0 = tpu.strided_load %arg0[%c0, %c0_0] {strides = array<i32: 1, 4>} : memref<8x512xf32, #tpu.memory_space<vmem>>, vector<8x128xf32>
    %c0_1 = arith.constant 0 : index
    %c1 = arith.constant 1 : index
    %1 = tpu.strided_load %arg0[%c0_1, %c1] {strides = array<i32: 1, 4>} : memref<8x512xf32, #tpu.memory_space<vmem>>, vector<8x128xf32>
    %2 = arith.addf %0, %1 : vector<8x128xf32>
    %c0_2 = arith.constant 0 : index
    %c2 = arith.constant 2 : index
    %3 = tpu.strided_load %arg0[%c0_2, %c2] {strides = array<i32: 1, 4>} : memref<8x512xf32, #tpu.memory_space<vmem>>, vector<8x128xf32>
    %4 = arith.addf %2, %3 : vector<8x128xf32>
    %c0_3 = arith.constant 0 : index
    %c3 = arith.constant 3 : index
    %5 = tpu.strided_load %arg0[%c0_3, %c3] {strides = array<i32: 1, 4>} : memref<8x512xf32, #tpu.memory_space<vmem>>, vector<8x128xf32>
    %6 = arith.addf %4, %5 : vector<8x128xf32>
    %c0_4 = arith.constant 0 : index
    %c0_5 = arith.constant 0 : index
    %7 = vector.load %arg1[%c0_4, %c0_5] : memref<8x128xf32, #tpu.memory_space<vmem>>, vector<8x128xf32>
    tpu.vector_store %arg1[%c0_4, %c0_5], %6 {strides = array<i32>} : memref<8x128xf32, #tpu.memory_space<vmem>>, vector<8x128xf32>,
    return
  }
}

module attributes {stable_mosaic.version = 11 : i64} {
  func.func @kernel(%arg0: i32, %arg1: i32, %arg2: memref<8x128xf32, #tpu.memory_space<vmem>>, %arg3: memref<8x128xf32, #tpu.memory_space<vmem>>, %arg4: memref<8x128xf32, #tpu.memory_space<vmem>>, %arg5: memref<8x128xf32, #tpu.memory_space<vmem>>, %arg6: memref<4x8x128xf32, #tpu.memory_space<vmem>>, %arg7: memref<8x128xf32, #tpu.memory_space<vmem>>) attributes {dimension_semantics = [#tpu.dimension_semantics<parallel>, #tpu.dimension_semantics<parallel>], iteration_bounds = array<i64: 1, 2>, scalar_prefetch = 0 : i64, scratch_operands = 0 : i64, tpu.core_type = #tpu.core_type<tc>, window_params = [{transform_indices = @transform_0, window_bounds = array<i64: 8, 128>}, {transform_indices = @transform_1, window_bounds = array<i64: 8, 128>}, {transform_indices = @transform_2, window_bounds = array<i64: 8, 128>}, {transform_indices = @transform_3, window_bounds = array<i64: 8, 128>}, {transform_indices = @transform_4, window_bounds = array<i64: 4, 8, 128>}, {transform_indices = @transform_5, window_bounds = array<i64: 8, 128>}]} {
    %c0 = arith.constant 0 : index
    %c0_0 = arith.constant 0 : index
    %0 = vector.load %arg2[%c0, %c0_0] : memref<8x128xf32, #tpu.memory_space<vmem>>, vector<8x128xf32>
    %c0_1 = arith.constant 0 : index
    %c0_2 = arith.constant 0 : index
    %c0_3 = arith.constant 0 : index
    %1 = vector.load %arg6[%c0_1, %c0_2, %c0_3] : memref<4x8x128xf32, #tpu.memory_space<vmem>>, vector<1x8x128xf32>
    %2 = vector.shape_cast %1 : vector<1x8x128xf32> to vector<8x128xf32>
    %3 = arith.mulf %0, %2 : vector<8x128xf32>
    %c0_4 = arith.constant 0 : index
    %c0_5 = arith.constant 0 : index
    %4 = vector.load %arg3[%c0_4, %c0_5] : memref<8x128xf32, #tpu.memory_space<vmem>>, vector<8x128xf32>
    %c1 = arith.constant 1 : index
    %c0_6 = arith.constant 0 : index
    %c0_7 = arith.constant 0 : index
    %5 = vector.load %arg6[%c1, %c0_6, %c0_7] : memref<4x8x128xf32, #tpu.memory_space<vmem>>, vector<1x8x128xf32>
    %6 = vector.shape_cast %5 : vector<1x8x128xf32> to vector<8x128xf32>
    %7 = arith.mulf %4, %6 : vector<8x128xf32>
    %8 = arith.addf %3, %7 : vector<8x128xf32>
    %c0_8 = arith.constant 0 : index
    %c0_9 = arith.constant 0 : index
    %9 = vector.load %arg4[%c0_8, %c0_9] : memref<8x128xf32, #tpu.memory_space<vmem>>, vector<8x128xf32>
    %c2 = arith.constant 2 : index
    %c0_10 = arith.constant 0 : index
    %c0_11 = arith.constant 0 : index
    %10 = vector.load %arg6[%c2, %c0_10, %c0_11] : memref<4x8x128xf32, #tpu.memory_space<vmem>>, vector<1x8x128xf32>
    %11 = vector.shape_cast %10 : vector<1x8x128xf32> to vector<8x128xf32>
    %12 = arith.mulf %9, %11 : vector<8x128xf32>
    %13 = arith.addf %8, %12 : vector<8x128xf32>
    %c0_12 = arith.constant 0 : index
    %c0_13 = arith.constant 0 : index
    %14 = vector.load %arg5[%c0_12, %c0_13] : memref<8x128xf32, #tpu.memory_space<vmem>>, vector<8x128xf32>
    %c3 = arith.constant 3 : index
    %c0_14 = arith.constant 0 : index
    %c0_15 = arith.constant 0 : index
    %15 = vector.load %arg6[%c3, %c0_14, %c0_15] : memref<4x8x128xf32, #tpu.memory_space<vmem>>, vector<1x8x128xf32>
    %16 = vector.shape_cast %15 : vector<1x8x128xf32> to vector<8x128xf32>
    %17 = arith.mulf %14, %16 : vector<8x128xf32>
    %18 = arith.addf %13, %17 : vector<8x128xf32>
    %c0_16 = arith.constant 0 : index
    %c0_17 = arith.constant 0 : index
    %19 = vector.load %arg7[%c0_16, %c0_17] : memref<8x128xf32, #tpu.memory_space<vmem>>, vector<8x128xf32>
    tpu.vector_store %arg7[%c0_16, %c0_17], %18 {strides = array<i32>} : memref<8x128xf32, #tpu.memory_space<vmem>>, vector<8x128xf32>,
    return
  }
  func.func @transform_0(%arg0: i32, %arg1: i32) -> (i32, i32) {
    %c0_i32 = arith.constant 0 : i32
    return %arg0, %arg1 : i32, i32
  }
  func.func @transform_1(%arg0: i32, %arg1: i32) -> (i32, i32) {
    %c0_i32 = arith.constant 0 : i32
    return %arg0, %arg1 : i32, i32
  }
  func.func @transform_2(%arg0: i32, %arg1: i32) -> (i32, i32) {
    %c0_i32 = arith.constant 0 : i32
    return %arg0, %arg1 : i32, i32
  }
  func.func @transform_3(%arg0: i32, %arg1: i32) -> (i32, i32) {
    %c0_i32 = arith.constant 0 : i32
    return %arg0, %arg1 : i32, i32
  }
  func.func @transform_4(%arg0: i32, %arg1: i32) -> (i32, i32, i32) {
    %c0_i32 = arith.constant 0 : i32
    %c0_i32_0 = arith.constant 0 : i32
    return %c0_i32, %arg0, %arg1 : i32, i32, i32
  }
  func.func @transform_5(%arg0: i32, %arg1: i32) -> (i32, i32) {
    %c0_i32 = arith.constant 0 : i32
    return %arg0, %arg1 : i32, i32
  }
}

</mosaic_0001>

<bundles_post_ra>
// kernel: tpu_custom_call.1
= control target key start
LH: loop header
LB: loop body
LE: loop exit
PB: predicated region body
PF: predicated region fallthrough
CT: control target
= control target key end

     0   :  { %s1347_s0 = inlined_call_operand.hbm [shape: f32[8,256], index: 0, kind: input, shape index: {}]   ;;  %s1348_s1 = inlined_call_operand.hbm [shape: f32[8,256], index: 1, kind: input, shape index: {}]   ;;  %s1349_s2 = inlined_call_operand.hbm [shape: f32[8,256], index: 2, kind: input, shape index: {}]   ;;  %s1350_s3 = inlined_call_operand.hbm [shape: f32[8,256], index: 3, kind: input, shape index: {}]   ;;  %s1351_s4 = inlined_call_operand.hbm [shape: f32[4,8,256], index: 4, kind: input, shape index: {}]   ;;  %s1352_s5 = inlined_call_operand.hbm [shape: f32[8,256], index: 5, kind: output, shape index: {}]  }
   0x1   :  { %1364 = sst [smem:[#allocation22_spill]] %s1348_s1 }
   0x2   :  { %10 = vsyncpa [#allocation3], 0 }
   0x3   :  { %12 = vsyncpa [#allocation3 + $0x1], 0 }
   0x4   :  { %13 = vsyncpa [#allocation6], 0 }
   0x5   :  { %15 = vsyncpa [#allocation6 + $0x1], 0 }
   0x6   :  { %16 = vsyncpa [#allocation9], 0 }
   0x7   :  { %18 = vsyncpa [#allocation9 + $0x1], 0 }
   0x8   :  { %19 = vsyncpa [#allocation4], 0 }
   0x9   :  { %21 = vsyncpa [#allocation4 + $0x1], 0  ;;  %s1023_s18 = smov 0   ;;  %s1025_s19 = smov 0  }
   0xa   :  { %s1027_s20 = smov 0   ;;  %s1029_s21 = smov 0  }
   0xb   :  { %s1031_s22 = smov 0   ;;  %s1033_s23 = smov 0  }
   0xc LB: > { %1365 = sst [smem:[#allocation16_spill]] %s970_s20  ;;  %s1054_s24 = sadd.s32 4294967295, %s982_s23   ;;  %s982_s23 = sphi %s1033_s23, %s27_s23   ;;  %s978_s22 = sphi %s1031_s22, %s1394_s22   ;;  %s974_s21 = sphi %s1029_s21, %s1393_s21   ;;  %s970_s20 = sphi %s1027_s20, %s1392_s20   ;;  %s966_s19 = sphi %s1025_s19, %s1396_s19   ;;  %s962_s18 = sphi %s1023_s18, %s1395_s18  }
   0xd   : > { %1366 = sst [smem:[#allocation17_spill]] %s978_s22  ;;  %s630_s25 = sadd.s32 4294967294, %s982_s23  }
   0xe   : > { %1367 = sst [smem:[#allocation18_spill]] %s982_s23  ;;  %s36_s26 = sadd.s32 1, %s978_s22 }
   0xf   : > { %s48_s27 = sadd.s32 1, %s970_s20  ;;  %p37_p0 = scmp.ge.s32.totalorder %s36_s26, 2 }
  0x10   : > { %p55_p1 = scmp.ne.s32.totalorder %s970_s20, %s966_s19  ;;  %p56_p2 = scmp.eq.s32.totalorder %s982_s23, 0 }
  0x11   : > { %p61_p3 = scmp.ne.s32.totalorder %s966_s19, %s962_s18  ;;  %s1398_s26 = smov (%p37_p0, %s36_s26), 0 }
  0x12   : > { %1368 = sst [smem:[#allocation19_spill]] %s1398_s26  ;;  %p1066_p4 = por %p56_p2, %p55_p1 }
  0x13   : > { %p62_p5 = scmp.eq.s32.totalorder %s1054_s24, 0  ;;  %s44_s29 = ssub.s32 %s978_s22, %s1398_s26 }
  0x14   : > { %p199_p6 = scmp.eq.s32.totalorder %s1054_s24, 1  ;;  %p46_p7 = scmp.eq.s32.totalorder %s44_s29, 0 }
  0x15   : > { %p1074_p8 = por %p62_p5, %p61_p3  ;;  %p205_p10 = scmp.eq.s32.totalorder %s630_s25, 1 }
  0x16   : > { %p1078_p9 = por %p199_p6, %p55_p1  ;;  %p689_p13 = scmp.lt.s32.totalorder %s982_s23, 2 }
  0x17   : > { %s1370_s30 = scalar_select %p1074_p8, 1, 0 }
  0x18   : > { %s1371_s6 = scalar_select %p1078_p9, 1, 0 }
  0x19   : > { %s1083_s7 = scalar_select %p46_p7, %s970_s20, %s48_s27  }
  0x1a   : > { %p1085_p11 = por %p205_p10, %p61_p3  ;;  %s1092_s9 = sand.u32 1, %s970_s20  }
  0x1b   : > { %1372 = sst [smem:[#allocation20_spill]] %s1083_s7  ;;  %s1095_s10 = sshll.u32 %s1092_s9, 3 }
  0x1c   : > { %s1373_s8 = scalar_select %p1085_p11, 1, 0 }
  0x1d   : > { %s1098_s11 = sshll.u32 %s978_s22, 7  ;;  %p1102_p0 = pnand %p689_p13, %p1066_p4 }
  0x1e   : > { %1374 = sst [smem:[#allocation21_spill]] %s1373_s8  ;;  %s1355_s13 = sand.u32 1, %s982_s23  }
  0x1f   : > { %s1375_s12 = scalar_select %p1102_p0, 1, 0 }
  0x20   : > { %s1376_s1 = sld [smem:[#allocation22_spill]]  ;;  %s249_s17 = scalar_lea.vmem [#allocation5], %s1095_s10 }
  0x21   : > { %s258_s25 = sshll.u32 %s249_s17, 4  ;;  %s1119_s28 = scalar_lea.sflag [#allocation6], %s1355_s13  ;;  %s1115_s25 = int_to_ptr.vmem [resolvable:$true] %s258_s25 }
  0x22   : > { %p1125_p2 = pneg %p1102_p0 }
  0x26   : > { %s1111_s16 = scalar_lea.hbm %s1376_s1, %s1098_s11  ;;  %s747_s17 = scalar_lea.hbm %s1376_s1, 256 }
  0x27   : > { %s742_s29 = scalar_lea.hbm %s1111_s16, 128  ;;  %p748_p5 = scmp.lt.u32.totalorder %s1111_s16, %s1376_s1 }
  0x28   : > { %p743_p1 = scmp.ne.s32.totalorder %s1111_s16, %s742_s29  ;;  %p749_p6 = scmp.lt.u32.totalorder %s747_s17, %s742_s29 }
  0x29   : > { %p751_p10 = scmp.lt.u32.totalorder %s742_s29, %s1111_s16 }
  0x2a   : > { %p745_p3 = pnand %p1125_p2, %p743_p1  ;;  %p750_p7 = por %p749_p6, %p748_p5 }
  0x2c   : > { %p746_p4 = pneg %p745_p3  ;;  %p752_p13 = por %p751_p10, %p750_p7 }
  0x2e   : > { %p753_p12 = pnand %p752_p13, %p746_p4 }
  0x30   : > { %756 = shalt.err (!%p753_p12)
}
  0x31   : > { %s757_s13 = scalar_lea.vmem %s1115_s25, 128  ;;  %s984_s14 = smov [#allocation5]  }
  0x32   : > { %p758_p1 = scmp.ne.s32.totalorder %s1115_s25, %s757_s13  ;;  %s762_s15 = sshll.u32 %s984_s14, 4  ;;  %s763_s15 = int_to_ptr.vmem [resolvable:$false] %s762_s15 }
  0x33   : > { %s764_s22 = scalar_lea.vmem %s763_s15, 256  ;;  %p765_p9 = scmp.lt.s32.totalorder %s1115_s25, %s763_s15 }
  0x34   : > { %p760_p3 = pnand %p758_p1, %p1125_p2  ;;  %p766_p8 = scmp.lt.s32.totalorder %s764_s22, %s757_s13 }
  0x36   : > { %p761_p11 = pneg %p760_p3  ;;  %p767_p5 = por %p766_p8, %p765_p9 }
  0x38   : > { %p768_p6 = pnand %p767_p5, %p761_p11 }
  0x3a   : > { %771 = shalt.err (!%p768_p6)
}
  0x3b   : > { %675 = dma.hbm_to_vmem [thread:$0]  (!%p1102_p0), %s1111_s16, 128, %s1115_s25, %s1119_s28  }
  0x3c   : > { %s1378_s27 = sshll.u32 %s1092_s9, 5  ;;  %p643_p12 = scmp.ge.s32.totalorder %s982_s23, 1 }
  0x3d   : > { %s309_s29 = scalar_lea.vmem [#allocation10], %s1378_s27  ;;  %p325_p8 = scmp.lt.s32.totalorder %s982_s23, 3 }
  0x3e   : > { %s317_s17 = sshll.u32 %s309_s29, 4  ;;  %s1163_s22 = scalar_lea.hbm %s1350_s3, %s1098_s11  ;;  %s1152_s17 = int_to_ptr.vmem [resolvable:$true] %s317_s17 }
  0x3f   : > { %p1155_p9 = pnand %p643_p12, %p325_p8  ;;  %s289_s16 = scalar_lea.vmem [#allocation8], %s1095_s10 }
  0x40   : > { %s298_s25 = sshll.u32 %s289_s16, 4  ;;  %s1380_s27 = sand.u32 1, %s982_s23   ;;  %s299_s25 = int_to_ptr.vmem [resolvable:$true] %s298_s25 }
  0x41   : > { %s1379_s13 = scalar_select %p1155_p9, 1, 0 }
  0x42   : > { %s1168_s29 = scalar_lea.sflag [#allocation9], %s1380_s27  ;;  %s772_s1 = scalar_lea.hbm %s1163_s22, 128 }
  0x43   : > { %p773_p11 = scmp.ne.s32.totalorder %s1163_s22, %s772_s1  ;;  %s777_s14 = scalar_lea.hbm %s1350_s3, 256 }
  0x44   : > { %p778_p10 = scmp.lt.u32.totalorder %s1163_s22, %s1350_s3  ;;  %p779_p13 = scmp.lt.u32.totalorder %s777_s14, %s772_s1 }
  0x45   : > { %p775_p4 = pnand %p773_p11, %p1125_p2  ;;  %p781_p3 = scmp.lt.u32.totalorder %s772_s1, %s1163_s22 }
  0x46   : > { %p780_p1 = por %p779_p13, %p778_p10 }
  0x47   : > { %p776_p7 = pneg %p775_p4 }
  0x48   : > { %p782_p5 = por %p781_p3, %p780_p1 }
  0x4a   : > { %p783_p6 = pnand %p782_p5, %p776_p7 }
  0x4c   : > { %786 = shalt.err (!%p783_p6)
}
  0x4d   : > { %s787_s16 = scalar_lea.vmem %s299_s25, 128  ;;  %s985_s27 = smov [#allocation8]  }
  0x4e   : > { %p788_p12 = scmp.ne.s32.totalorder %s299_s25, %s787_s16  ;;  %s792_s23 = sshll.u32 %s985_s27, 4  ;;  %s793_s23 = int_to_ptr.vmem [resolvable:$false] %s792_s23 }
  0x4f   : > { %s794_s20 = scalar_lea.vmem %s793_s23, 256  ;;  %p795_p4 = scmp.lt.s32.totalorder %s299_s25, %s793_s23 }
  0x50   : > { %p790_p8 = pnand %p788_p12, %p1125_p2  ;;  %p796_p9 = scmp.lt.s32.totalorder %s794_s20, %s787_s16 }
  0x52   : > { %p791_p11 = pneg %p790_p8  ;;  %p797_p0 = por %p796_p9, %p795_p4 }
  0x54   : > { %p798_p10 = pnand %p797_p0, %p791_p11 }
  0x56   : > { %801 = shalt.err (!%p798_p10)
}
  0x57   : > { %p1381_p13 = scmp.ne.s32.totalorder %s1375_s12, 0  ;;  %s1192_s8 = scalar_lea.hbm %s1347_s0, %s1098_s11 }
  0x58   : > { %s229_s23 = scalar_lea.vmem [#allocation2], %s1095_s10  ;;  %s226_s15 = scalar_lea.sflag [#allocation3], %s1092_s9 }
  0x59   : > { %681 = dma.hbm_to_vmem [thread:$0]  (!%p1381_p13), %s1163_s22, 128, %s299_s25, %s1168_s29  }
  0x5a   : > { %s238_s14 = sshll.u32 %s229_s23, 4  ;;  %s802_s16 = scalar_lea.hbm %s1192_s8, 128  ;;  %s239_s14 = int_to_ptr.vmem [resolvable:$true] %s238_s14 }
  0x5b   : > { %p803_p0 = scmp.ne.s32.totalorder %s1192_s8, %s802_s16  ;;  %s807_s25 = scalar_lea.hbm %s1347_s0, 256 }
  0x5c   : > { %p808_p1 = scmp.lt.u32.totalorder %s1192_s8, %s1347_s0  ;;  %p809_p3 = scmp.lt.u32.totalorder %s807_s25, %s802_s16 }
  0x5d   : > { %p805_p9 = pnand %p803_p0, %p1125_p2  ;;  %p811_p6 = scmp.lt.u32.totalorder %s802_s16, %s1192_s8 }
  0x5e   : > { %p810_p5 = por %p809_p3, %p808_p1 }
  0x5f   : > { %p806_p7 = pneg %p805_p9 }
  0x60   : > { %p812_p12 = por %p811_p6, %p810_p5 }
  0x62   : > { %p813_p8 = pnand %p812_p12, %p806_p7 }
  0x64   : > { %816 = shalt.err (!%p813_p8)
}
  0x65   : > { %s817_s9 = scalar_lea.vmem %s239_s14, 128  ;;  %s986_s7 = smov [#allocation2]  }
  0x66   : > { %p818_p11 = scmp.ne.s32.totalorder %s239_s14, %s817_s9  ;;  %s822_s23 = sshll.u32 %s986_s7, 4  ;;  %s823_s23 = int_to_ptr.vmem [resolvable:$false] %s822_s23 }
  0x67   : > { %s824_s27 = scalar_lea.vmem %s823_s23, 256  ;;  %p825_p0 = scmp.lt.s32.totalorder %s239_s14, %s823_s23 }
  0x68   : > { %p820_p4 = pnand %p818_p11, %p1125_p2  ;;  %p826_p9 = scmp.lt.s32.totalorder %s824_s27, %s817_s9 }
  0x6a   : > { %p821_p10 = pneg %p820_p4  ;;  %p827_p13 = por %p826_p9, %p825_p0 }
  0x6c   : > { %p828_p1 = pnand %p827_p13, %p821_p10 }
  0x6e   : > { %831 = shalt.err (!%p828_p1)
}
  0x6f   : > { %p1382_p3 = scmp.ne.s32.totalorder %s1375_s12, 0  ;;  %s1217_s25 = scalar_lea.hbm %s1349_s2, %s1098_s11 }
  0x70   : > { %s269_s20 = scalar_lea.vmem [#allocation7], %s1095_s10  ;;  %s1224_s23 = scalar_lea.hbm %s1351_s4, %s1098_s11 }
  0x71   : > { %672 = dma.hbm_to_vmem [thread:$0]  (!%p1382_p3), %s1192_s8, 128, %s239_s14, %s226_s15  }
  0x72   : > { %s278_s1 = sshll.u32 %s269_s20, 4  ;;  %s832_s27 = scalar_lea.hbm %s1217_s25, 128  ;;  %s279_s1 = int_to_ptr.vmem [resolvable:$true] %s278_s1 }
  0x73   : > { %p833_p13 = scmp.ne.s32.totalorder %s1217_s25, %s832_s27  ;;  %s837_s15 = scalar_lea.hbm %s1349_s2, 256 }
  0x74   : > { %p838_p6 = scmp.lt.u32.totalorder %s1217_s25, %s1349_s2  ;;  %p839_p12 = scmp.lt.u32.totalorder %s837_s15, %s832_s27 }
  0x75   : > { %p835_p7 = pnand %p833_p13, %p1125_p2  ;;  %p841_p11 = scmp.lt.u32.totalorder %s832_s27, %s1217_s25 }
  0x76   : > { %p840_p8 = por %p839_p12, %p838_p6 }
  0x77   : > { %p836_p5 = pneg %p835_p7 }
  0x78   : > { %p842_p4 = por %p841_p11, %p840_p8 }
  0x7a   : > { %p843_p10 = pnand %p842_p4, %p836_p5 }
  0x7c   : > { %846 = shalt.err (!%p843_p10)
}
  0x7d   : > { %s847_s10 = scalar_lea.vmem %s279_s1, 128  ;;  %s987_s11 = smov [#allocation7]  }
  0x7e   : > { %p848_p0 = scmp.ne.s32.totalorder %s279_s1, %s847_s10  ;;  %s852_s20 = sshll.u32 %s987_s11, 4  ;;  %s853_s20 = int_to_ptr.vmem [resolvable:$false] %s852_s20 }
  0x7f   : > { %s854_s9 = scalar_lea.vmem %s853_s20, 256  ;;  %p855_p13 = scmp.lt.s32.totalorder %s279_s1, %s853_s20 }
  0x80   : > { %p850_p9 = pnand %p848_p0, %p1125_p2  ;;  %p856_p7 = scmp.lt.s32.totalorder %s854_s9, %s847_s10 }
  0x82   : > { %p851_p1 = pneg %p850_p9  ;;  %p857_p3 = por %p856_p7, %p855_p13 }
  0x84   : > { %p858_p6 = pnand %p857_p3, %p851_p1 }
  0x86   : > { %861 = shalt.err (!%p858_p6)
}
  0x87   : > { %p1383_p12 = scmp.ne.s32.totalorder %s1375_s12, 0  ;;  %s862_s7 = scalar_lea.hbm %s1224_s23, 512 }
  0x88   : > { %p863_p5 = scmp.ne.s32.totalorder %s1224_s23, %s862_s7  ;;  %s867_s14 = scalar_lea.hbm %s1351_s4, 1024 }
  0x89   : > { %678 = dma.hbm_to_vmem [thread:$0]  (!%p1383_p12), %s1217_s25, 128, %s279_s1, %s1119_s28  }
  0x8a   : > { %p865_p8 = pnand %p863_p5, %p1125_p2  ;;  %p868_p3 = scmp.lt.u32.totalorder %s1224_s23, %s1351_s4 }
  0x8b   : > { %p869_p4 = scmp.lt.u32.totalorder %s867_s14, %s862_s7  ;;  %p871_p0 = scmp.lt.u32.totalorder %s862_s7, %s1224_s23 }
  0x8c   : > { %p866_p11 = pneg %p865_p8 }
  0x8d   : > { %p870_p10 = por %p869_p4, %p868_p3 }
  0x8f   : > { %p872_p9 = por %p871_p0, %p870_p10 }
  0x91   : > { %p873_p1 = pnand %p872_p9, %p866_p11 }
  0x93   : > { %876 = shalt.err (!%p873_p1)
}
  0x94   : > { %s877_s28 = scalar_lea.vmem %s1152_s17, 512  ;;  %s988_s25 = smov [#allocation10]  }
  0x95   : > { %p878_p13 = scmp.ne.s32.totalorder %s1152_s17, %s877_s28  ;;  %s882_s1 = sshll.u32 %s988_s25, 4  ;;  %s883_s1 = int_to_ptr.vmem [resolvable:$false] %s882_s1 }
  0x96   : > { %s884_s22 = scalar_lea.vmem %s883_s1, 1024  ;;  %p885_p5 = scmp.lt.s32.totalorder %s1152_s17, %s883_s1 }
  0x97   : > { %p880_p7 = pnand %p878_p13, %p1125_p2  ;;  %p886_p8 = scmp.lt.s32.totalorder %s884_s22, %s877_s28 }
  0x99   : > { %p881_p6 = pneg %p880_p7  ;;  %p887_p3 = por %p886_p8, %p885_p5 }
  0x9b   : > { %p888_p4 = pnand %p887_p3, %p881_p6 }
  0x9d   : > { %891 = shalt.err (!%p888_p4)
}
  0x9e   : > { %s989_s10 = smov 256   ;;  %s990_s11 = smov 128  }
  0x9f   : > { %s991_s20 = smov 8   ;;  %p1384_p2 = scmp.ne.s32.totalorder %s1379_s13, 0 }
  0xa0   : > { %684 = dma.hbm_to_vmem [thread:$0]  (!%p1383_p12), %s1224_s23, 512, %s1152_s17, %s1168_s29, %s989_s10, %s990_s11, %s991_s20  }
  0xa1   : > { %329 = sbr.rel (%p1384_p2) target bundleno = 202 (0xca), region = 40  ;;  %s1269_s26 = sand.u32 (!%p1384_p2), 1, %s966_s19  }
  0xa2   : > { %s1272_s9 = sshll.u32 (!%p1384_p2), %s1269_s26, 3  ;;  %s332_s7 = scalar_lea.sflag (!%p1384_p2), [#allocation3], %s1269_s26 }
  0xa3   : > { %s335_s27 = scalar_lea.vmem (!%p1384_p2), [#allocation2], %s1272_s9  ;;  %p1385_p11 = scmp.ne.s32.totalorder (!%p1384_p2), %s1370_s30, 0 }
  0xa8   : > { %945 = dma.done.wait (%p1385_p11), %s332_s7, 128  }
  0xa9   : > { %947 = vsyncadd (%p1385_p11), %s332_s7, 4294967168  ;;  %s340_s12 = sand.u32 1, %s1054_s24   ;;  %s344_s13 = scalar_lea.vmem [#allocation5], %s1272_s9 }
  0xaa   : > { %s341_s17 = scalar_lea.sflag [#allocation6], %s340_s12 }
  0xab   : > { %949 = dma.done.wait (%p1385_p11), %s341_s17, 256  }
  0xac   : > { %951 = vsyncadd (%p1385_p11), %s341_s17, 4294967040  ;;  %s353_s29 = scalar_lea.vmem [#allocation7], %s1272_s9  ;;  %s359_s23 = scalar_lea.sflag [#allocation9], %s340_s12 }
  0xad   : > { %s362_s8 = scalar_lea.vmem [#allocation8], %s1272_s9 }
  0xae   : > { %953 = dma.done.wait (%p1385_p11), %s359_s23, 640  }
  0xaf   : > { %955 = vsyncadd (%p1385_p11), %s359_s23, 4294966656  ;;  %s648_s24 = sshll.u32 %s1269_s26, 5  ;;  %v418_v0 = vld [vmem:[%s335_s27] sm:$0xff]  ;;  %v421_v2 = vld [vmem:[%s344_s13] sm:$0xff]  ;;  %s417_s30 = scalar_lea.vmem [#allocation11], %s1272_s9 }
  0xb0   : > { %s371_s14 = scalar_lea.vmem [#allocation10], %s648_s24  ;;  %v426_v5 = vld [vmem:[%s353_s29] sm:$0xff]  ;;  %v431_v9 = vld [vmem:[%s362_s8] sm:$0xff]  ;;  %s453_s15 = sshll.u32 %s417_s30, 4  ;;  %s1295_s15 = int_to_ptr.vmem [resolvable:$true] %s453_s15 }
  0xb1   : > { %v419_v1 = vld [vmem:[%s371_s14] sm:$0xff]  ;;  %v650_v4 = vld [vmem:[%s371_s14 + $0x8] sm:$0xff]  ;;  %v651_v6 = vld [vmem:[%s371_s14 + $0x10] sm:$0xff]  ;;  %s654_s16 = sshll.u32 %s974_s21, 7  ;;  %s438_s22 = scalar_lea.sflag [#allocation4], %s1269_s26 }
  0xb2   : > { %v420_v3 = vmul.f32 %v419_v1, %v418_v0  ;;  %v424_v7 = vmul.f32 %v650_v4, %v421_v2  ;;  %v429_v8 = vmul.f32 %v651_v6, %v426_v5  ;;  %v652_v10 = vld [vmem:[%s371_s14 + $0x18] sm:$0xff]  ;;  %s1300_s1 = scalar_lea.hbm %s1352_s5, %s654_s16  ;;  %s892_s10 = scalar_lea.vmem %s1295_s15, 128 }
  0xb3   : > { %v434_v12 = vmul.f32 %v652_v10, %v431_v9  ;;  %p893_p12 = scmp.ne.s32.totalorder %s1295_s15, %s892_s10  ;;  %p1386_p10 = scmp.ne.s32.totalorder %s1371_s6, 0 }
  0xb4   : > { %v425_v11 = vadd.f32 %v424_v7, %v420_v3  ;;  %s992_s21 = smov [#allocation11]  }
  0xb5   : > { %p894_p0 = pnand %p893_p12, %p1386_p10  ;;  %s896_s11 = sshll.u32 %s992_s21, 4  ;;  %s897_s11 = int_to_ptr.vmem [resolvable:$false] %s896_s11 }
  0xb6   : > { %v430_v13 = vadd.f32 %v429_v8, %v425_v11  ;;  %s898_s20 = scalar_lea.vmem %s897_s11, 256  ;;  %p899_p1 = scmp.lt.s32.totalorder %s1295_s15, %s897_s11 }
  0xb7   : > { %p895_p9 = pneg %p894_p0  ;;  %p900_p13 = scmp.lt.s32.totalorder %s898_s20, %s892_s10 }
  0xb8   : > { %v435_v14 = vadd.f32 %v434_v12, %v430_v13 }
  0xb9   : > { %p901_p7 = por %p900_p13, %p899_p1 }
  0xba   : > { %436 = vst [vmem:[%s417_s30] sm:$0xff] %v435_v14 }
  0xbb   : > { %p902_p6 = pnand %p901_p7, %p895_p9 }
  0xbd   : > { %905 = shalt.err (!%p902_p6)
}
  0xbe   : > { %s906_s26 = scalar_lea.hbm %s1300_s1, 128  ;;  %s910_s27 = scalar_lea.hbm %s1352_s5, 256 }
  0xbf   : > { %p907_p5 = scmp.ne.s32.totalorder %s1300_s1, %s906_s26  ;;  %p911_p4 = scmp.lt.u32.totalorder %s1300_s1, %s1352_s5 }
  0xc0   : > { %p912_p2 = scmp.lt.u32.totalorder %s910_s27, %s906_s26  ;;  %p914_p12 = scmp.lt.u32.totalorder %s906_s26, %s1300_s1 }
  0xc1   : > { %p908_p8 = pnand %p907_p5, %p1386_p10 }
  0xc2   : > { %p913_p11 = por %p912_p2, %p911_p4 }
  0xc3   : > { %p909_p3 = pneg %p908_p8 }
  0xc4   : > { %p915_p0 = por %p914_p12, %p913_p11 }
  0xc6   : > { %p916_p9 = pnand %p915_p0, %p909_p3 }
  0xc8   : > { %919 = shalt.err (!%p916_p9)
}
  0xc9   : > { %667 = dma.vmem_to_hbm [thread:$0]  (%p1386_p10), %s1295_s15, 128, %s1300_s1, %s438_s22  }
  0xca PF: > { %s1387_s13 = sld [smem:[#allocation21_spill]]  ;;  %s1388_s29 = sld [smem:[#allocation18_spill]] }
  0xcb   : > { %s465_s23 = sand.u32 1, %s962_s18  }
  0xcc   : > { %s466_s8 = scalar_lea.sflag [#allocation4], %s465_s23 }
  0xd0   : > { %p1389_p1 = scmp.ne.s32.totalorder %s1387_s13, 0  ;;  %p1390_p13 = scmp.ge.s32.totalorder %s1388_s29, 2 }
  0xd2   : > { %p686_p7 = pnand %p1390_p13, %p1389_p1 }
  0xd4   : > { %957 = dma.done.wait (!%p686_p7), %s466_s8, 128  }
  0xd5   : > { %959 = vsyncadd (!%p686_p7), %s466_s8, 4294967168  ;;  %s27_s23 = sadd.s32 1, %s1388_s29   ;;  %s1391_s24 = sld [smem:[#allocation16_spill]] }
  0xd6   : > { %p24_p6 = scmp.ge.s32.totalorder %s27_s23, 4   ;;  %s1392_s20 = sld [smem:[#allocation20_spill]] }
  0xd7   : > { %s1393_s21 = sld [smem:[#allocation17_spill]]  ;;  %s1394_s22 = sld [smem:[#allocation19_spill]] }
  0xd8   : > { %s1395_s18 = smov %s966_s19  ;;  %26 = sbr.rel (!%p24_p6) target bundleno = 12 (0xc), region = 136 }
  0xdb   : > { %s1396_s19 = smov %s1391_s24 }
  0xdf   :  { %471 = vsyncpa [#allocation3], 1 }
  0xe0   :  { %473 = vsyncpa [#allocation3 + $0x1], 1 }
  0xe1   :  { %474 = vsyncpa [#allocation6], 1 }
  0xe2   :  { %476 = vsyncpa [#allocation6 + $0x1], 1 }
  0xe3   :  { %477 = vsyncpa [#allocation9], 1 }
  0xe4   :  { %479 = vsyncpa [#allocation9 + $0x1], 1 }
  0xe5   :  { %480 = vsyncpa [#allocation4], 1 }
  0xe6   :  { %482 = vsyncpa [#allocation4 + $0x1], 1 }

</bundles_post_ra>
